<compile_context>
chip_gen: v5e
topology: v5e:2x2
jax: 0.10.0
libtpu: 0.0.40
codegen_flags: <defaults>
</compile_context>

<pallas_src>
import functools

import jax
import jax.numpy as jnp
import numpy as np
from jax.experimental import pallas as pl
from jax.experimental.pallas import tpu as pltpu


# ---------------------------------------------------------------------------
# Kernel: one (batch, channel) grid step
# ---------------------------------------------------------------------------
def _mask_kernel(scale_ref, img_ref, r_ref, l_ref, out_ref, acc_ref, *, hs, ws):
    """Pool + Sobel + |.| accumulate; exp epilogue on the last channel.

    scale_ref: (1,)          f32 SMEM   -alpha / C
    img_ref  : (H, W)        f32 VMEM   one channel of one batch image
    r_ref    : (W, 2*Ws)     f32 VMEM   [RxT | RyT] folded pool+Sobel column ops
    l_ref    : (2*Hs, H)     f32 VMEM   [Lx ; Ly]   folded pool+Sobel row ops
    out_ref  : (2, Hs, Ws)   f32 VMEM   out[0] = mask_x, out[1] = mask_y
    acc_ref  : (2*Hs, 2*Ws)  f32 VMEM   scratch |grad| accumulator (across C)
    """
    c = pl.program_id(1)

    # Two small MXU matmuls: dx = Lx @ img @ RxT, dy = Ly @ img @ RyT.
    y = jnp.dot(img_ref[...], r_ref[...], preferred_element_type=jnp.float32)
    z = jnp.dot(l_ref[...], y, preferred_element_type=jnp.float32)
    a = jnp.abs(z)

    @pl.when(c == 0)
    def _():
        acc_ref[...] = a

    @pl.when(c > 0)
    def _():
        acc_ref[...] = acc_ref[...] + a

    @pl.when(c == pl.num_programs(1) - 1)
    def _():
        s = scale_ref[0]                                  # -alpha / C (mean + sign fold)
        out_ref[0] = jnp.exp(acc_ref[:hs, :ws] * s)       # Lx rows, RxT cols -> mask_x
        out_ref[1] = jnp.exp(acc_ref[hs:, ws:] * s)       # Ly rows, RyT cols -> mask_y


# ---------------------------------------------------------------------------
# Host-side operator construction (cached; becomes jit constants)
# ---------------------------------------------------------------------------
def _band(n, offsets_vals):
    """n x n banded matrix: m[i, i+off] = val (out-of-range entries dropped,
    exactly reproducing the zero padding of the 3x3 conv)."""
    m = np.zeros((n, n), np.float32)
    for off, val in offsets_vals:
        for i in range(n):
            j = i + off
            if 0 <= j < n:
                m[i, j] = val
    return m


def _pool_matrix(n_out, factor):
    """Area-pooling matrix (n_out, n_out*factor): averages each window."""
    m = np.zeros((n_out, n_out * factor), np.float32)
    for i in range(n_out):
        m[i, i * factor:(i + 1) * factor] = 1.0 / factor
    return m


@functools.lru_cache(maxsize=None)
def _operators(h, w, factor):
    hs, ws = h // factor, w // factor
    Ph = _pool_matrix(hs, factor)                        # (Hs, H)
    Pw = _pool_matrix(ws, factor)                        # (Ws, W)
    Av = _band(hs, [(-1, 1.0), (0, 2.0), (1, 1.0)])      # row smooth  [1,2,1]
    Bh = _band(ws, [(-1, -1.0), (1, 1.0)])               # col deriv  [-1,0,1]
    Ad = _band(hs, [(-1, -1.0), (1, 1.0)])               # row deriv  [-1,0,1]
    Bs = _band(ws, [(-1, 1.0), (0, 2.0), (1, 1.0)])      # col smooth [1,2,1]

    Lx = Av @ Ph                                         # (Hs, H)
    Ly = Ad @ Ph                                         # (Hs, H)
    RxT = (Bh @ Pw).T                                    # (W, Ws)
    RyT = (Bs @ Pw).T                                    # (W, Ws)

    r = np.concatenate([RxT, RyT], axis=1)               # (W, 2*Ws)
    lstack = np.concatenate([Lx, Ly], axis=0)            # (2*Hs, H)
    return jnp.asarray(r), jnp.asarray(lstack)           # shared, batch-independent


# ---------------------------------------------------------------------------
# Wrapper
# ---------------------------------------------------------------------------
@functools.partial(jax.jit, static_argnums=(2,))
def _forward_impl(image, alpha, factor):
    B, C, H, W = image.shape
    assert H % factor == 0 and W % factor == 0
    Hs, Ws = H // factor, W // factor

    r_op, l_op = _operators(H, W, factor)
    # alpha is traced -> no recompile per alpha value; scale lives in SMEM.
    scale = jnp.asarray(-alpha / C, jnp.float32).reshape(1)

    kernel = functools.partial(_mask_kernel, hs=Hs, ws=Ws)

    out = pl.pallas_call(
        kernel,
        out_shape=jax.ShapeDtypeStruct((B, 2, Hs, Ws), jnp.float32),
        grid=(B, C),
        in_specs=[
            # -alpha/C scalar
            pl.BlockSpec(memory_space=pltpu.MemorySpace.SMEM),
            # one (batch, channel) image tile per step (double-buffered DMA)
            pl.BlockSpec((None, None, H, W), lambda b, c: (b, c, 0, 0)),
            # shared operators: constant block index -> stay resident in VMEM
            pl.BlockSpec((W, 2 * Ws), lambda b, c: (0, 0)),
            pl.BlockSpec((2 * Hs, H), lambda b, c: (0, 0)),
        ],
        # same output block across the channel axis -> resident until b changes
        out_specs=pl.BlockSpec((None, 2, Hs, Ws), lambda b, c: (b, 0, 0, 0)),
        scratch_shapes=[pltpu.VMEM((2 * Hs, 2 * Ws), jnp.float32)],
        compiler_params=pltpu.CompilerParams(
            dimension_semantics=("parallel", "arbitrary")),
    )(scale, image, r_op, l_op)

    return [out[:, 0:1], out[:, 1:2]]                    # each (B, 1, Hs, Ws)


def mask_generator_forward(image, alpha, scale=1.0 / 4.0):
    """image: (B, C, H, W) float32.  Returns [mask_x, mask_y], each (B,1,Hs,Ws)."""
    factor = int(round(1.0 / scale))
    return _forward_impl(image, alpha, factor)


# ---------------------------------------------------------------------------
# Pure-JAX reference (matches the PyTorch module exactly)
# ---------------------------------------------------------------------------
def _reference(image, alpha, scale=1.0 / 4.0):
    B, C, H, W = image.shape
    f = int(round(1.0 / scale))
    pooled = image.reshape(B, C, H // f, f, W // f, f).mean(axis=(3, 5))
    dx_k = jnp.array([[-1, 0, 1], [-2, 0, 2], [-1, 0, 1]], jnp.float32)
    dy_k = jnp.array([[-1, -2, -1], [0, 0, 0], [1, 2, 1]], jnp.float32)
    kern = jnp.stack([dx_k, dy_k])[:, None]              # (2, 1, 3, 3)
    x = pooled.reshape(B * C, 1, H // f, W // f)
    g = jax.lax.conv_general_dilated(                    # cross-correlation
        x, kern, window_strides=(1, 1), padding=((1, 1), (1, 1)),
        dimension_numbers=("NCHW", "OIHW", "NCHW"))
    g = g.reshape(B, C, 2, H // f, W // f)
    mx = jnp.exp(-jnp.mean(jnp.abs(g[:, :, 0]), axis=1, keepdims=True) * alpha)
    my = jnp.exp(-jnp.mean(jnp.abs(g[:, :, 1]), axis=1, keepdims=True) * alpha)
    return [mx, my]


if __name__ == "__main__":
    key = jax.random.PRNGKey(0)
    B, C, H, W = 2, 3, 64, 64                            # RGB, NCHW
    image = jax.random.uniform(key, (B, C, H, W), dtype=jnp.float32)
    alpha = 2.0

    masks = mask_generator_forward(image, alpha)
    masks = jax.block_until_ready(masks)

    ref = _reference(image, alpha)
    for m, r in zip(masks, ref):
        assert m.shape == r.shape and m.dtype == jnp.float32
        np.testing.assert_allclose(np.asarray(m), np.asarray(r),
                                   rtol=1e-2, atol=1e-4)
    print("KERNEL_OK")
</pallas_src>

<mosaic_0001>
module attributes {stable_mosaic.version = 11 : i64} {
  func.func @_mask_kernel(%arg0: i32, %arg1: i32, %arg2: memref<1xf32, #tpu.memory_space<smem>>, %arg3: memref<1x1x64x64xf32, #tpu.memory_space<vmem>>, %arg4: memref<64x32xf32, #tpu.memory_space<vmem>>, %arg5: memref<32x64xf32, #tpu.memory_space<vmem>>, %arg6: memref<1x2x16x16xf32, #tpu.memory_space<vmem>>, %arg7: memref<32x32xf32, #tpu.memory_space<vmem>>) attributes {dimension_semantics = [#tpu.dimension_semantics<parallel>, #tpu.dimension_semantics<arbitrary>], iteration_bounds = array<i64: 2, 3>, scalar_prefetch = 0 : i64, scratch_operands = 1 : i64, tpu.core_type = #tpu.core_type<tc>, window_params = [{transform_indices = @transform_0, window_bounds = array<i64: 1>}, {transform_indices = @transform_1, window_bounds = array<i64: 1, 1, 64, 64>}, {pipeline_mode = #tpu.pipeline_mode<synchronous>, transform_indices = @transform_2, window_bounds = array<i64: 64, 32>}, {pipeline_mode = #tpu.pipeline_mode<synchronous>, transform_indices = @transform_3, window_bounds = array<i64: 32, 64>}, {transform_indices = @transform_4, window_bounds = array<i64: 1, 2, 16, 16>}]} {
    %c0 = arith.constant 0 : index
    %c0_0 = arith.constant 0 : index
    %c0_1 = arith.constant 0 : index
    %c0_2 = arith.constant 0 : index
    %0 = vector.load %arg3[%c0, %c0_0, %c0_1, %c0_2] : memref<1x1x64x64xf32, #tpu.memory_space<vmem>>, vector<1x1x64x64xf32>
    %1 = vector.shape_cast %0 : vector<1x1x64x64xf32> to vector<64x64xf32>
    %c0_3 = arith.constant 0 : index
    %c0_4 = arith.constant 0 : index
    %2 = vector.load %arg4[%c0_3, %c0_4] : memref<64x32xf32, #tpu.memory_space<vmem>>, vector<64x32xf32>
    %cst = arith.constant dense<0.000000e+00> : vector<64x32xf32>
    %3 = tpu.matmul %1, %2, %cst {dimension_numbers = #tpu.dot_dimension_numbers<[1], [0], [0], [1], [0, 0, 1, 1], [], []>} : vector<64x64xf32>, vector<64x32xf32>, vector<64x32xf32> -> vector<64x32xf32>
    %c0_5 = arith.constant 0 : index
    %c0_6 = arith.constant 0 : index
    %4 = vector.load %arg5[%c0_5, %c0_6] : memref<32x64xf32, #tpu.memory_space<vmem>>, vector<32x64xf32>
    %cst_7 = arith.constant dense<0.000000e+00> : vector<32x32xf32>
    %5 = tpu.matmul %4, %3, %cst_7 {dimension_numbers = #tpu.dot_dimension_numbers<[1], [0], [0], [1], [0, 0, 1, 1], [], []>} : vector<32x64xf32>, vector<64x32xf32>, vector<32x32xf32> -> vector<32x32xf32>
    %6 = math.absf %5 : vector<32x32xf32>
    %c0_i32 = arith.constant 0 : i32
    %7 = arith.cmpi eq, %arg1, %c0_i32 : i32
    %8 = arith.extui %7 : i1 to i32
    %c0_i32_8 = arith.constant 0 : i32
    %9 = arith.cmpi ne, %8, %c0_i32_8 : i32
    scf.if %9 {
      %c0_12 = arith.constant 0 : index
      %c0_13 = arith.constant 0 : index
      %16 = vector.load %arg7[%c0_12, %c0_13] : memref<32x32xf32, #tpu.memory_space<vmem>>, vector<32x32xf32>
      tpu.vector_store %arg7[%c0_12, %c0_13], %6 {strides = array<i32>} : memref<32x32xf32, #tpu.memory_space<vmem>>, vector<32x32xf32>,
    } else {
    }
    %c0_i32_9 = arith.constant 0 : i32
    %10 = arith.cmpi sgt, %arg1, %c0_i32_9 : i32
    %11 = arith.extui %10 : i1 to i32
    %c0_i32_10 = arith.constant 0 : i32
    %12 = arith.cmpi ne, %11, %c0_i32_10 : i32
    scf.if %12 {
      %c0_12 = arith.constant 0 : index
      %c0_13 = arith.constant 0 : index
      %16 = vector.load %arg7[%c0_12, %c0_13] : memref<32x32xf32, #tpu.memory_space<vmem>>, vector<32x32xf32>
      %17 = arith.addf %16, %6 : vector<32x32xf32>
      %c0_14 = arith.constant 0 : index
      %c0_15 = arith.constant 0 : index
      %18 = vector.load %arg7[%c0_14, %c0_15] : memref<32x32xf32, #tpu.memory_space<vmem>>, vector<32x32xf32>
      tpu.vector_store %arg7[%c0_14, %c0_15], %17 {strides = array<i32>} : memref<32x32xf32, #tpu.memory_space<vmem>>, vector<32x32xf32>,
    } else {
    }
    %c2_i32 = arith.constant 2 : i32
    %13 = arith.cmpi eq, %arg1, %c2_i32 : i32
    %14 = arith.extui %13 : i1 to i32
    %c0_i32_11 = arith.constant 0 : i32
    %15 = arith.cmpi ne, %14, %c0_i32_11 : i32
    scf.if %15 {
      %c0_12 = arith.constant 0 : index
      %16 = memref.load %arg2[%c0_12] : memref<1xf32, #tpu.memory_space<smem>>
      %c0_13 = arith.constant 0 : index
      %c0_14 = arith.constant 0 : index
      %17 = vector.load %arg7[%c0_13, %c0_14] : memref<32x32xf32, #tpu.memory_space<vmem>>, vector<16x16xf32>
      %18 = vector.broadcast %16 : f32 to vector<16x16xf32>
      %19 = arith.mulf %17, %18 : vector<16x16xf32>
      %20 = math.exp %19 : vector<16x16xf32>
      %c0_15 = arith.constant 0 : index
      %c0_16 = arith.constant 0 : index
      %c0_17 = arith.constant 0 : index
      %c0_18 = arith.constant 0 : index
      %21 = vector.load %arg6[%c0_15, %c0_16, %c0_17, %c0_18] : memref<1x2x16x16xf32, #tpu.memory_space<vmem>>, vector<1x1x16x16xf32>
      %22 = vector.shape_cast %21 : vector<1x1x16x16xf32> to vector<16x16xf32>
      %23 = vector.shape_cast %20 : vector<16x16xf32> to vector<1x1x16x16xf32>
      tpu.vector_store %arg6[%c0_15, %c0_16, %c0_17, %c0_18], %23 {strides = array<i32>} : memref<1x2x16x16xf32, #tpu.memory_space<vmem>>, vector<1x1x16x16xf32>,
      %c16 = arith.constant 16 : index
      %c16_19 = arith.constant 16 : index
      %24 = vector.load %arg7[%c16, %c16_19] : memref<32x32xf32, #tpu.memory_space<vmem>>, vector<16x16xf32>
      %25 = vector.broadcast %16 : f32 to vector<16x16xf32>
      %26 = arith.mulf %24, %25 : vector<16x16xf32>
      %27 = math.exp %26 : vector<16x16xf32>
      %c0_20 = arith.constant 0 : index
      %c1 = arith.constant 1 : index
      %c0_21 = arith.constant 0 : index
      %c0_22 = arith.constant 0 : index
      %28 = vector.load %arg6[%c0_20, %c1, %c0_21, %c0_22] : memref<1x2x16x16xf32, #tpu.memory_space<vmem>>, vector<1x1x16x16xf32>
      %29 = vector.shape_cast %28 : vector<1x1x16x16xf32> to vector<16x16xf32>
      %30 = vector.shape_cast %27 : vector<16x16xf32> to vector<1x1x16x16xf32>
      tpu.vector_store %arg6[%c0_20, %c1, %c0_21, %c0_22], %30 {strides = array<i32>} : memref<1x2x16x16xf32, #tpu.memory_space<vmem>>, vector<1x1x16x16xf32>,
    } else {
    }
    return
  }
  func.func @transform_0(%arg0: i32, %arg1: i32) -> i32 {
    %c0_i32 = arith.constant 0 : i32
    %c0_i32_0 = arith.constant 0 : i32
    return %c0_i32 : i32
  }
  func.func @transform_1(%arg0: i32, %arg1: i32) -> (i32, i32, i32, i32) {
    %c0_i32 = arith.constant 0 : i32
    %c0_i32_0 = arith.constant 0 : i32
    %c0_i32_1 = arith.constant 0 : i32
    return %arg0, %arg1, %c0_i32, %c0_i32_0 : i32, i32, i32, i32
  }
  func.func @transform_2(%arg0: i32, %arg1: i32) -> (i32, i32) {
    %c0_i32 = arith.constant 0 : i32
    %c0_i32_0 = arith.constant 0 : i32
    %c0_i32_1 = arith.constant 0 : i32
    return %c0_i32, %c0_i32_0 : i32, i32
  }
  func.func @transform_3(%arg0: i32, %arg1: i32) -> (i32, i32) {
    %c0_i32 = arith.constant 0 : i32
    %c0_i32_0 = arith.constant 0 : i32
    %c0_i32_1 = arith.constant 0 : i32
    return %c0_i32, %c0_i32_0 : i32, i32
  }
  func.func @transform_4(%arg0: i32, %arg1: i32) -> (i32, i32, i32, i32) {
    %c0_i32 = arith.constant 0 : i32
    %c0_i32_0 = arith.constant 0 : i32
    %c0_i32_1 = arith.constant 0 : i32
    %c0_i32_2 = arith.constant 0 : i32
    return %arg0, %c0_i32, %c0_i32_0, %c0_i32_1 : i32, i32, i32, i32
  }
}

</mosaic_0001>

<bundles_post_ra>
// kernel: _forward_impl.1
= control target key start
LH: loop header
LB: loop body
LE: loop exit
PB: predicated region body
PF: predicated region fallthrough
CT: control target
= control target key end

     0   :  { %s1100_s0 = inlined_call_operand.<no memory space> [shape: f32[1], index: 0, kind: input, shape index: {}]   ;;  %s1101_s1 = inlined_call_operand.hbm [shape: f32[2,3,64,64], index: 1, kind: input, shape index: {}]   ;;  %s1102_s2 = inlined_call_operand.hbm [shape: f32[64,32], index: 2, kind: input, shape index: {}]   ;;  %s1103_s3 = inlined_call_operand.hbm [shape: f32[32,64], index: 3, kind: input, shape index: {}]   ;;  %s1104_s4 = inlined_call_operand.vmem [shape: f32[2,2,16,16], index: 4, kind: output, shape index: {}]  }
   0x1   :  { %1109 = sst [smem:[#allocation13_spill]] %s1102_s2 }
   0x2   :  { %1110 = sst [smem:[#allocation14_spill]] %s1103_s3 }
   0x3   :  { %9 = sst [smem:[#allocation3]] %s1100_s0 }
   0x4   :  { %10 = vsyncpa [#allocation5], 0 }
   0x5   :  { %12 = vsyncpa [#allocation5 + $0x1], 0 }
   0x6   :  { %13 = vsyncpa [#allocation7], 0  ;;  %s921_s17 = smov 0   ;;  %s923_s18 = smov 0  }
   0x7   :  { %s925_s19 = smov 0   ;;  %s927_s20 = smov 0  }
   0x8   :  { %s929_s21 = smov 0   ;;  %s931_s22 = smov 0  }
   0x9   :  { %s933_s23 = smov 0   ;;  %s935_s24 = smov 0  }
   0xa LB: > { %s563_s0 = sadd.s32 4294967295, %s886_s24   ;;  %p74_p0 = scmp.ne.s32.totalorder %s862_s18, %s858_s17  ;;  %s886_s24 = sphi %s935_s24, %s19_s24   ;;  %s882_s23 = sphi %s933_s23, %s1129_s23   ;;  %s878_s22 = sphi %s931_s22, %s1128_s22   ;;  %s874_s21 = sphi %s929_s21, %s1127_s21   ;;  %s870_s20 = sphi %s927_s20, %s1126_s20   ;;  %s866_s19 = sphi %s925_s19, %s1125_s19   ;;  %s862_s18 = sphi %s923_s18, %s1124_s18   ;;  %s858_s17 = sphi %s921_s17, %s1123_s17  }
   0xb   : > { %p961_p1 = scmp.eq.s32.totalorder %s563_s0, 0  ;;  %p565_p2 = scmp.ge.s32.totalorder %s886_s24, 1 }
   0xc   : > { %p153_p3 = scmp.lt.s32.totalorder %s886_s24, 7  ;;  %s1113_s2 = sld [smem:[#allocation13_spill]] }
   0xd   : > { %p969_p4 = por %p961_p1, %p74_p0  ;;  %s888_s5 = smov [#allocation6]  }
   0xe   : > { %p976_p5 = pnand %p565_p2, %p153_p3  ;;  %s169_s6 = sshll.u32 %s888_s5, 4  ;;  %s170_s6 = int_to_ptr.vmem [resolvable:$true] %s169_s6 }
   0xf   : > { %s1115_s3 = sld [smem:[#allocation14_spill]]  ;;  %s1105_s10 = smov 128  }
  0x10   : > { %p633_p6 = pneg %p976_p5  ;;  %s1106_s11 = smov 8  }
  0x11   : > { %s891_s12 = smov [#allocation8]   ;;  %s28_s14 = sadd.s32 1, %s878_s22 }
  0x12   : > { %s167_s29 = sshll.u32 %s1113_s2, 4  ;;  %p634_p7 = pnand %p633_p6, %p961_p1  ;;  %s168_s29 = int_to_ptr.hbm [resolvable:$true] %s167_s29 }
  0x13   : > { %s183_s13 = sshll.u32 %s891_s12, 4  ;;  %p29_p8 = scmp.ge.s32.totalorder %s28_s14, 3  ;;  %s184_s13 = int_to_ptr.vmem [resolvable:$true] %s183_s13 }
  0x14   : > { %636 = dma.hbm_to_vmem [thread:$0]  (!%p634_p7), %s168_s29, 1024, %s170_s6, [#allocation7], %s1105_s10, %s1105_s10, %s1106_s11  }
  0x15   : > { %s181_s9 = sshll.u32 %s1115_s3, 4  ;;  %s31_s15 = sadd.s32 1, %s882_s23  ;;  %s182_s9 = int_to_ptr.hbm [resolvable:$true] %s181_s9 }
  0x16   : > { %639 = dma.hbm_to_vmem [thread:$0]  (!%p634_p7), %s182_s9, 512, %s184_s13, [#allocation7], %s1105_s10, %s1105_s10, %s1106_s11  }
  0x17   : > { %p68_p9 = scmp.ne.s32.totalorder %s866_s19, %s862_s18  ;;  %p69_p10 = scmp.eq.s32.totalorder %s886_s24, 0 }
  0x18   : > { %s1131_s14 = smov (%p29_p8, %s28_s14), 0  ;;  %s1133_s15 = smov (!%p29_p8, %s31_s15), %s882_s23 }
  0x19   : > { %1116 = sst [smem:[#allocation11_spill]] %s1131_s14  ;;  %s57_s16 = ssub.s32 %s878_s22, %s1131_s14 }
  0x1a   : > { %s61_s17 = sadd.s32 1, %s866_s19  ;;  %p33_p11 = scmp.ge.s32.totalorder %s1133_s15, 2 }
  0x1b   : > { %p1004_p12 = por %p69_p10, %p68_p9  ;;  %p646_p13 = scmp.lt.s32.totalorder %s886_s24, 6 }
  0x1c   : > { %s197_s27 = sand.u32 1, %s866_s19   ;;  %s1135_s15 = smov (%p33_p11, %s1133_s15), 0 }
  0x1d   : > { %1118 = sst [smem:[#allocation12_spill]] %s1135_s15  ;;  %s569_s28 = sshll.u32 %s197_s27, 6 }
  0x1e   : > { %s570_s29 = sshll.u32 %s878_s22, 3  ;;  %s56_s5 = ssub.s32 %s882_s23, %s1135_s15 }
  0x1f   : > { %s58_s6 = sor.u32 %s57_s16, %s56_s5  ;;  %s622_s7 = smul.u32 24, %s882_s23 }
  0x20   : > { %p59_p0 = scmp.eq.s32.totalorder %s58_s6, 0  ;;  %s201_s9 = scalar_lea.vmem [#allocation4], %s569_s28 }
  0x21   : > { %s206_s8 = sadd.s32 %s622_s7, %s570_s29  ;;  %s211_s12 = sshll.u32 %s201_s9, 4  ;;  %s212_s12 = int_to_ptr.vmem [resolvable:$true] %s211_s12 }
  0x22   : > { %s1017_s13 = scalar_select %p59_p0, %s866_s19, %s61_s17  }
  0x23   : > { %s571_s10 = sshll.u32 %s206_s8, 3  ;;  %p641_p2 = pnand %p646_p13, %p1004_p12 }
  0x24   : > { %s208_s3 = scalar_lea.hbm %s1101_s1, %s571_s10  ;;  %s198_s15 = scalar_lea.sflag [#allocation5], %s197_s27 }
  0x25   : > { %s209_s14 = sshll.u32 %s208_s3, 4  ;;  %s1119_s16 = smov 8   ;;  %s210_s14 = int_to_ptr.hbm [resolvable:$true] %s209_s14 }
  0x26   : > { %s1120_s5 = smov 128   ;;  %223 = sbr.rel (%p976_p5) target bundleno = 526 (0x20e), region = 36 }
  0x27   : > { %643 = dma.hbm_to_vmem [thread:$0]  (!%p641_p2), %s210_s14, 1024, %s212_s12, %s198_s15, %s1120_s5, %s1120_s5, %s1119_s16  }
  0x28   : > { %s225_s17 = sand.u32 (!%p976_p5), 1, %s862_s18  }
  0x29   : > { %s573_s0 = sshll.u32 (!%p976_p5), %s225_s17, 6  ;;  %s226_s28 = scalar_lea.sflag (!%p976_p5), [#allocation5], %s225_s17 }
  0x2a   : > { %s1032_s29 = scalar_lea.vmem (!%p976_p5), [#allocation4], %s573_s0 }
  0x2b   : > { %849 = dma.done.wait (%p969_p4), %s226_s28, 1024  }
  0x2c   : > { %851 = vsyncadd (%p969_p4), %s226_s28, 4294966272 }
  0x2d   : > { %853 = dma.done.wait (%p961_p1), [#allocation7], 1536  }
  0x2e   : > { %855 = vsyncadd (%p961_p1), [#allocation7], 4294965760  ;;  %p265_p3 = scmp.lt.s32.totalorder %s874_s21, 1  ;;  %v285_v0 = vld [vmem:[#allocation6 + $0x38] sm:$0xff]  ;;  %v284_v1 = vld [vmem:[#allocation6 + $0x30] sm:$0xff]  ;;  %vm286_vm0 = vcmask 523264  }
  0x2f   : > { %598 = vmatpush.msra.mxu2 %v285_v0  ;;  %599 = vmatpush.msra.mxu3 %v285_v0  ;;  %v283_v2 = vld [vmem:[#allocation6 + $0x28] sm:$0xff]  ;;  %v282_v3 = vld [vmem:[#allocation6 + $0x20] sm:$0xff]  ;;  %v281_v4 = vld [vmem:[#allocation6 + $0x18] sm:$0xff]  ;;  %p590_p1 = scmp.ne.s32.totalorder %s870_s20, 0 }
  0x30   : > { %s1137_s21 = smov (!%p265_p3, %s874_s21), 1  ;;  %319 = vmatpush.msra.mxu0 %v285_v0  ;;  %v280_v5 = vld [vmem:[#allocation6 + $0x10] sm:$0xff]  ;;  %v279_v6 = vld [vmem:[#allocation6 + $0x8] sm:$0xff]  ;;  %v278_v7 = vld [vmem:[#allocation6] sm:$0xff] }
  0x31   : > { %s597_s2 = sshll.u32 %s1137_s21, 5  ;;  %600 = vmatpush.msra.mxu2 %v284_v1  ;;  %601 = vmatpush.msra.mxu3 %v284_v1  ;;  %v273_v8 = vld [vmem:[%s1032_s29 + $0x18] sm:$0xff]  ;;  %v276_v9 = vld [vmem:[%s1032_s29 + $0x30] sm:$0xff]  ;;  %v270_v10 = vld [vmem:[%s1032_s29] sm:$0xff] }
  0x32   : > { %s1047_s10 = scalar_lea.vmem %s1104_s4, %s597_s2  ;;  %320 = vmatpush.msra.mxu0 %v284_v1  ;;  %v274_v11 = vld [vmem:[%s1032_s29 + $0x20] sm:$0xff]  ;;  %v277_v12 = vld [vmem:[%s1032_s29 + $0x38] sm:$0xff]  ;;  %v271_v13 = vld [vmem:[%s1032_s29 + $0x8] sm:$0xff] }
  0x33   : > { %602 = vmatpush.msra.mxu2 %v283_v2  ;;  %603 = vmatpush.msra.mxu3 %v283_v2  ;;  %v275_v14 = vld [vmem:[%s1032_s29 + $0x28] sm:$0xff]  ;;  %v272_v15 = vld [vmem:[%s1032_s29 + $0x10] sm:$0xff]  ;;  %v352_v24 = vld [vmem:[#allocation8] sm:$0xff] }
  0x34   : > { %321 = vmatpush.msra.mxu0 %v283_v2  ;;  %v355_v25 = vld [vmem:[#allocation8 + $0x18] sm:$0xff]  ;;  %v353_v26 = vld [vmem:[#allocation8 + $0x8] sm:$0xff]  ;;  %v354_v27 = vld [vmem:[#allocation8 + $0x10] sm:$0xff] }
  0x35   : > { %604 = vmatpush.msra.mxu2 %v282_v3  ;;  %605 = vmatpush.msra.mxu3 %v282_v3 }
  0x36   : > { %322 = vmatpush.msra.mxu0 %v282_v3 }
  0x37   : > { %606 = vmatpush.msra.mxu2 %v281_v4  ;;  %607 = vmatpush.msra.mxu3 %v281_v4 }
  0x38   : > { %323 = vmatpush.msra.mxu0 %v281_v4 }
  0x39   : > { %608 = vmatpush.msra.mxu2 %v280_v5  ;;  %609 = vmatpush.msra.mxu3 %v280_v5 }
  0x3a   : > { %324 = vmatpush.msra.mxu0 %v280_v5 }
  0x3b   : > { %610 = vmatpush.msra.mxu2 %v279_v6  ;;  %611 = vmatpush.msra.mxu3 %v279_v6 }
  0x3c   : > { %325 = vmatpush.msra.mxu0 %v279_v6 }
  0x3d   : > { %612 = vmatpush.msra.mxu2 %v278_v7  ;;  %613 = vmatpush.msra.mxu3 %v278_v7 }
  0x3e   : > { %581 = vmatmul.msk.f32.vlgmr.msra.gmra.mxu2 %vm286_vm0, %v273_v8  ;;  %584 = vmatmul.msk.f32.vlgmr.msra.gmra.mxu3 %vm286_vm0, %v276_v9 }
  0x3f   : > { %326 = vmatpush.msra.mxu0 %v278_v7 }
  0x40   : > { %578 = vmatmul.msk.f32.vlgmr.msra.gmra.mxu0 %vm286_vm0, %v270_v10 }
  0x46   : > { %582 = vmatmul.msk.f32.gmra.mxu2 %vm286_vm0, %v274_v11  ;;  %585 = vmatmul.msk.f32.gmra.mxu3 %vm286_vm0, %v277_v12 }
  0x48   : > { %579 = vmatmul.msk.f32.gmra.mxu0 %vm286_vm0, %v271_v13 }
  0x4e   : > { %583 = vmatmul.msk.f32.gmra.mxu2 %vm286_vm0, %v275_v14 }
  0x50   : > { %580 = vmatmul.msk.f32.gmra.mxu0 %vm286_vm0, %v272_v15 }
  0xbd   : > { %v328_v16 = vpop.f32.mrf.mxu0 }
  0xc1   : > { %v337_v17 = vpop.f32.mrf.mxu2  ;;  %v346_v18 = vpop.f32.mrf.mxu3 }
  0xc5   : > { %v331_v21 = vpop.f32.mrf.mxu0 }
  0xc9   : > { %v340_v19 = vpop.f32.mrf.mxu2  ;;  %v349_v20 = vpop.f32.mrf.mxu3 }
  0xca   : > { %376 = vmatpush.msra.mxu1 %v349_v20  ;;  %614 = vmatpush.msrb.mxu3 %v349_v20 }
  0xcc   : > { %377 = vmatpush.msra.mxu1 %v346_v18  ;;  %615 = vmatpush.msrb.mxu3 %v346_v18 }
  0xcd   : > { %v334_v23 = vpop.f32.mrf.mxu0 }
  0xd1   : > { %v343_v22 = vpop.f32.mrf.mxu2 }
  0xd2   : > { %378 = vmatpush.msra.mxu1 %v343_v22  ;;  %616 = vmatpush.msrb.mxu3 %v343_v22 }
  0xd4   : > { %379 = vmatpush.msra.mxu1 %v340_v19  ;;  %617 = vmatpush.msrb.mxu3 %v340_v19 }
  0xd6   : > { %380 = vmatpush.msra.mxu1 %v337_v17  ;;  %618 = vmatpush.msrb.mxu3 %v337_v17 }
  0xd8   : > { %381 = vmatpush.msra.mxu1 %v334_v23  ;;  %619 = vmatpush.msrb.mxu3 %v334_v23 }
  0xda   : > { %382 = vmatpush.msra.mxu1 %v331_v21  ;;  %620 = vmatpush.msrb.mxu3 %v331_v21 }
  0xdc   : > { %383 = vmatpush.msra.mxu1 %v328_v16  ;;  %621 = vmatpush.msrb.mxu3 %v328_v16 }
  0xdd   : > { %586 = vmatmul.msk.f32.vlgmr.msra.gmra.mxu1 %vm286_vm0, %v352_v24  ;;  %589 = vmatmul.msk.f32.vlgmr.msrb.gmra.mxu3 %vm286_vm0, %v355_v25 }
  0xe5   : > { %587 = vmatmul.msk.f32.gmra.mxu1 %vm286_vm0, %v353_v26 }
  0xed   : > { %588 = vmatmul.msk.f32.gmra.mxu1 %vm286_vm0, %v354_v27 }
 0x15a   : > { %v385_v28 = vpop.f32.mrf.mxu1 }
 0x15b   : > { %v397_v29 = vand.u32 2147483647, %v385_v28 }
 0x160   : > { %v394_v30 = vpop.f32.mrf.mxu3 }
 0x161   : > { %v400_v31 = vand.u32 2147483647, %v394_v30 }
 0x162   : > { %v388_v32 = vpop.f32.mrf.mxu1 }
 0x163   : > { %v398_v33 = vand.u32 2147483647, %v388_v32 }
 0x167   : > { %404 = sbr.rel (%p590_p1) target bundleno = 369 (0x171), region = 52 }
 0x16a   : > { %v391_v34 = vpop.f32.mrf.mxu1 }
 0x16b   : > { %v399_v35 = vand.u32 2147483647, %v391_v34 }
 0x16c   : > { %vm405_vm1 = vcmask 261120  }
 0x16d   : > { %406 = vst.msk [vmem:[#allocation2] sm:$0xff] %vm405_vm1, %v397_v29 }
 0x16e   : > { %407 = vst.msk [vmem:[#allocation2 + $0x8] sm:$0xff] %vm405_vm1, %v398_v33 }
 0x16f   : > { %408 = vst.msk [vmem:[#allocation2 + $0x10] sm:$0xff] %vm405_vm1, %v399_v35 }
 0x170   : > { %409 = vst.msk [vmem:[#allocation2 + $0x18] sm:$0xff] %vm405_vm1, %v400_v31 }
 0x171 PF: > { %p591_p4 = scmp.le.s32.totalorder %s870_s20, 0 }
 0x173   : > { %413 = sbr.rel (%p591_p4) target bundleno = 383 (0x17f), region = 56 }
 0x178   : > { %v414_v36 = vld [vmem:[#allocation2] sm:$0xff]  ;;  %vm422_vm2 = vcmask 261120   ;;  %v415_v37 = vld [vmem:[#allocation2 + $0x8] sm:$0xff]  ;;  %v416_v38 = vld [vmem:[#allocation2 + $0x10] sm:$0xff] }
 0x179   : > { %v418_v39 = vadd.f32 %v414_v36, %v397_v29  ;;  %v419_v40 = vadd.f32 %v415_v37, %v398_v33  ;;  %v420_v41 = vadd.f32 %v416_v38, %v399_v35  ;;  %v417_v42 = vld [vmem:[#allocation2 + $0x18] sm:$0xff] }
 0x17a   : > { %v421_v43 = vadd.f32 %v417_v42, %v400_v31 }
 0x17b   : > { %423 = vst.msk [vmem:[#allocation2] sm:$0xff] %vm422_vm2, %v418_v39 }
 0x17c   : > { %424 = vst.msk [vmem:[#allocation2 + $0x8] sm:$0xff] %vm422_vm2, %v419_v40 }
 0x17d   : > { %425 = vst.msk [vmem:[#allocation2 + $0x10] sm:$0xff] %vm422_vm2, %v420_v41 }
 0x17e   : > { %426 = vst.msk [vmem:[#allocation2 + $0x18] sm:$0xff] %vm422_vm2, %v421_v43 }
 0x17f PF: > { %p592_p5 = scmp.ne.s32.totalorder %s870_s20, 2 }
 0x180   : > { %s431_s21 = sld [smem:[#allocation3]] (!%p592_p5)  ;;  %s892_s25 = smov (!%p592_p5), 112  }
 0x181   : > { %430 = sbr.rel (%p592_p5) target bundleno = 526 (0x20e), region = 60 }
 0x186   : > { %v444_v44 = vld [vmem:[#allocation2 + $0x10] sm:$0xff]  ;;  %v434_v45 = vstv %s431_s21  ;;  %v445_v46 = vld [vmem:[#allocation2 + $0x18] sm:$0xff]  ;;  %v432_v53 = vld [vmem:[#allocation2] sm:$0xff]  ;;  %vm441_vm3 = vcmask 130048  }
 0x187   : > { %v446_v47 = vmul.f32 %v444_v44, %v434_v45  ;;  %v447_v48 = vmul.f32 %v445_v46, %v434_v45  ;;  %v433_v54 = vld [vmem:[#allocation2 + $0x8] sm:$0xff]  ;;  %v435_v55 = vmul.f32 %v434_v45, %v432_v53 }
 0x188   : > { %v436_v56 = vmul.f32 %v434_v45, %v433_v54 }
 0x189   : > { %v448_v49 = vmul.f32 1.442695, %v446_v47  ;;  %v450_v50 = vmul.f32 1.442695, %v447_v48  ;;  %v437_v57 = vmul.f32 1.442695, %v435_v55 }
 0x18a   : > { %v439_v58 = vmul.f32 1.442695, %v436_v56 }
 0x18b   : > { %718 = vpow2.f32 %v448_v49 }
 0x18c   : > { %720 = vpow2.f32 %v450_v50 }
 0x18d   : > { %722 = vpow2.f32 %v437_v57 }
 0x18e   : > { %724 = vpow2.f32 %v439_v58 }
 0x191   : > { %v719_v51 = vpop.eup %718 }
 0x192   : > { %454 = vrot.lane.b32.xlu0 %v719_v51, %s892_s25  ;;  %v721_v52 = vpop.eup %720 }
 0x193   : > { %v723_v59 = vpop.eup %722 }
 0x194   : > { %v725_v60 = vpop.eup %724  ;;  %442 = vst.msk [vmem:[%s1047_s10] sm:$0xff] %vm441_vm3, %v723_v59 }
 0x195   : > { %443 = vst.msk [vmem:[%s1047_s10 + $0x8] sm:$0xff] %vm441_vm3, %v725_v60 }
 0x19a   : > { %456 = vrot.lane.b32.xlu0 %v721_v52, %s892_s25 }
 0x204   : > { %v455_v61 = vpop.permute.xlu0 %454 }
 0x205   : > { %593 = vst.msk [vmem:[%s1047_s10 + $0x10] sm:$0xff] %vm441_vm3, %v455_v61 }
 0x20c   : > { %v457_v62 = vpop.permute.xlu0 %456 }
 0x20d   : > { %594 = vst.msk [vmem:[%s1047_s10 + $0x18] sm:$0xff] %vm441_vm3, %v457_v62 }
 0x20e PF: > { %s19_s24 = sadd.s32 1, %s886_s24   ;;  %s1121_s26 = sld [smem:[#allocation11_spill]] }
 0x20f   : > { %p16_p6 = scmp.ge.s32.totalorder %s19_s24, 8   ;;  %s1122_s11 = sld [smem:[#allocation12_spill]] }
 0x210   : > { %s1123_s17 = smov %s862_s18  ;;  %s1124_s18 = smov %s866_s19 }
 0x211   : > { %s1125_s19 = smov %s1017_s13  ;;  %s1126_s20 = smov %s878_s22 }
 0x212   : > { %s1127_s21 = smov %s882_s23  ;;  %18 = sbr.rel (!%p16_p6) target bundleno = 10 (0xa), region = 97 }
 0x214   : > { %s1128_s22 = smov %s1121_s26 }
 0x215   : > { %s1129_s23 = smov %s1122_s11 }
 0x217   :  { %484 = vsyncpa [#allocation5], 1 }
 0x218   :  { %486 = vsyncpa [#allocation5 + $0x1], 1 }
 0x219   :  { %487 = vsyncpa [#allocation7], 1 }

</bundles_post_ra>
